<compile_context>
chip_gen: v5e
topology: v5e:2x2
jax: 0.10.0
libtpu: 0.0.40
codegen_flags: <defaults>
</compile_context>

<pallas_src>
import functools

import jax
import jax.numpy as jnp
from jax import lax
from jax.experimental import pallas as pl
from jax.experimental.pallas import tpu as pltpu


def _layer_norm(h, g, b, eps=1e-5):
    # Two-pass (centered) variance: avoids catastrophic cancellation of
    # E[x^2] - mu^2 when post-residual activations develop a large mean.
    mu = jnp.mean(h, axis=-1, keepdims=True)
    c = h - mu
    var = jnp.mean(c * c, axis=-1, keepdims=True)
    return c * lax.rsqrt(var + eps) * g + b


def _encoder_stack_kernel(
    x_hbm,                                       # (B*S, E) f32, left in HBM (pl.ANY)
    wq_ref, bq_ref, wk_ref, bk_ref, wv_ref, bv_ref,
    g1_ref, be1_ref, w1_ref, b1_ref, w2_ref, b2_ref, g2_ref, be2_ref,
    o_ref,
    h_ref, copy_sem,                             # resident VMEM activation + DMA sem
    *, num_heads, head_dim, batch_block, seq_len, matmul_dtype,
):
    b = pl.program_id(0)
    l = pl.program_id(1)
    Bb, S, H, d = batch_block, seq_len, num_heads, head_dim
    Mblk = Bb * S

    # Load this batch block's rows of x exactly once (layer 0); x is NOT kept
    # as a double-buffered pipelined input across all L layer iterations.
    @pl.when(l == 0)
    def _():
        cp = pltpu.make_async_copy(
            x_hbm.at[pl.ds(b * Mblk, Mblk), :], h_ref, copy_sem)
        cp.start()
        cp.wait()

    x = h_ref[...]                               # (Mblk, E) f32
    cd = matmul_dtype
    xc = x.astype(cd)

    def proj(w_ref, b_ref):
        # weights pre-cast to matmul_dtype on the host; f32 accumulation.
        return jnp.dot(xc, w_ref[0], preferred_element_type=jnp.float32) + b_ref[0]

    # Fold 1/sqrt(head_dim) into q once (one (M,E) multiply).
    q = proj(wq_ref, bq_ref) * (1.0 / jnp.sqrt(jnp.float32(d)))
    k = proj(wk_ref, bk_ref)
    v = proj(wv_ref, bv_ref)

    # Batch all heads: per-head lane slices stacked along a new LEADING axis
    # (cheap: leading dims are untiled) -> (H*Bb, S, d), then a single pair of
    # batched einsums for scores / PV instead of H separate einsums + concat
    # of score matmuls.  (At head_dim=8 the MXU contraction is starved either
    # way; fewer, larger pushes is still strictly better.)
    def split_heads(t):
        t3 = t.astype(cd).reshape(Bb, S, H * d)
        return jnp.concatenate(
            [t3[:, :, h * d:(h + 1) * d] for h in range(H)], axis=0)

    qh, kh, vh = split_heads(q), split_heads(k), split_heads(v)

    s = jnp.einsum("gqd,gkd->gqk", qh, kh, preferred_element_type=jnp.float32)
    s = s - jnp.max(s, axis=-1, keepdims=True)
    p = jnp.exp(s)
    p = p * pl.reciprocal(jnp.sum(p, axis=-1, keepdims=True), approx=True)
    o = jnp.einsum("gqk,gkd->gqd", p.astype(cd), vh,
                   preferred_element_type=jnp.float32)       # (H*Bb, S, d)

    o4 = o.reshape(H, Bb, S, d)
    attn = jnp.concatenate([o4[h] for h in range(H)], axis=-1).reshape(Mblk, H * d)

    # residual + LayerNorm 1 (PyTorch default eps=1e-5)
    n1 = _layer_norm(x + attn, g1_ref[0], be1_ref[0])

    # FFN: Linear(E, 4E) -> ReLU -> Linear(4E, E)
    ff = jnp.dot(n1.astype(cd), w1_ref[0], preferred_element_type=jnp.float32) + b1_ref[0]
    ff = jnp.maximum(ff, 0.0)
    ff = jnp.dot(ff.astype(cd), w2_ref[0], preferred_element_type=jnp.float32) + b2_ref[0]

    # residual + LayerNorm 2
    n2 = _layer_norm(n1 + ff, g2_ref[0], be2_ref[0])

    h_ref[...] = n2                              # stays in VMEM for the next layer

    @pl.when(l == pl.num_programs(1) - 1)
    def _():
        # TODO(synk): for tiny E (<128) a lane-dense output layout
        # ((Mblk*E/128, 128)) would avoid masked vst; skipped to keep the
        # in-kernel lane-changing reshape out of the lowering path.
        o_ref[...] = n2.astype(o_ref.dtype)


_MATMUL_WEIGHT_IDX = (0, 2, 4, 8, 10)            # wq, wk, wv, w1, w2


def _tpu_vmem_and_cores():
    """Best-effort per-generation VMEM capacity and TensorCore count."""
    vmem_bytes, n_cores = 64 * 1024 * 1024, 1    # safe defaults (v7x-sized)
    try:
        info = pltpu.get_tpu_info()
        vmem_bytes = int(getattr(info, "vmem_capacity_bytes", vmem_bytes))
        for attr in ("num_cores", "num_tensorcores", "cores_per_chip",
                     "tensorcores_per_chip"):
            val = getattr(info, attr, None)
            if val:
                n_cores = int(val)
                break
    except Exception:
        pass
    return vmem_bytes, n_cores


def transformer_encoder(x, layer_params, *, num_heads,
                        matmul_dtype=jnp.bfloat16, batch_block=None):
    """Whole encoder stack as one fused pallas_call.  x: (B, S, E)."""
    B, S, E = x.shape
    L = len(layer_params)
    F = 4 * E
    head_dim = E // num_heads
    out_dtype = x.dtype
    mm_bytes = jnp.dtype(matmul_dtype).itemsize

    # Stack per-layer params along a leading L axis; pre-cast matmul weights
    # to matmul_dtype on the host, keep biases / LN params in f32.
    stacked = [jnp.stack(p, axis=0) for p in zip(*layer_params)]
    stacked = [a.astype(matmul_dtype) if i in _MATMUL_WEIGHT_IDX
               else a.astype(jnp.float32) for i, a in enumerate(stacked)]

    vmem_bytes, n_cores = _tpu_vmem_and_cores()

    # Generation-aware batch split: split only when >1 TensorCore (v7x).
    # Single-TC chips (v5e/v6e) use one block -> weights streamed once.
    if batch_block is None:
        if n_cores > 1 and B % n_cores == 0 and ((B // n_cores) * S) % 8 == 0:
            batch_block = B // n_cores
        else:
            batch_block = B
    assert B % batch_block == 0, "batch_block must divide the batch size"

    # Rough per-step VMEM fit check (v7x: 64 MiB): double-buffered weights +
    # resident activation + output block + FFN intermediates.
    wbytes = sum((a.size // L) * a.dtype.itemsize for a in stacked)

    def _fits(bb):
        m = bb * S
        fp = (2 * wbytes + m * E * 4
              + 2 * m * E * jnp.dtype(out_dtype).itemsize + 2 * m * F * 4)
        return fp <= int(0.7 * vmem_bytes)

    while batch_block > 1 and not _fits(batch_block):
        nxt = next(dd for dd in range(B // batch_block + 1, B + 1) if B % dd == 0)
        batch_block = B // nxt
    if batch_block != B and (batch_block * S) % 8 != 0:
        batch_block = B                          # keep the (8,128) block rule

    nb = B // batch_block
    Mblk = batch_block * S

    def layer_spec(arr):
        blk = (1,) + arr.shape[1:]
        zeros = (0,) * (arr.ndim - 1)
        return pl.BlockSpec(blk, lambda b, l, z=zeros: (l,) + z)

    in_specs = [pl.BlockSpec(memory_space=pl.ANY)]          # x stays in HBM
    in_specs += [layer_spec(a) for a in stacked]

    kernel = functools.partial(
        _encoder_stack_kernel,
        num_heads=num_heads, head_dim=head_dim,
        batch_block=batch_block, seq_len=S, matmul_dtype=matmul_dtype)

    flops = 2 * L * B * S * (3 * E * E + 2 * S * E + 2 * E * F)
    transcendentals = L * B * (num_heads * S * S + num_heads * S + 2 * S)
    bytes_accessed = (4 * 2 * B * S * E
                      + nb * L * ((3 * E * E + 2 * E * F) * mm_bytes
                                  + (8 * E + F) * 4))

    out2 = pl.pallas_call(
        kernel,
        out_shape=jax.ShapeDtypeStruct((B * S, E), out_dtype),
        grid_spec=pltpu.PrefetchScalarGridSpec(
            num_scalar_prefetch=0,
            grid=(nb, L),                        # layer axis innermost
            in_specs=in_specs,
            out_specs=pl.BlockSpec((Mblk, E), lambda b, l: (b, 0)),
            scratch_shapes=[pltpu.VMEM((Mblk, E), jnp.float32),
                            pltpu.SemaphoreType.DMA],
        ),
        compiler_params=pltpu.CompilerParams(
            dimension_semantics=("parallel", "arbitrary"),
            vmem_limit_bytes=int(0.8 * vmem_bytes),
        ),
        cost_estimate=pl.CostEstimate(
            flops=flops, transcendentals=transcendentals,
            bytes_accessed=bytes_accessed),
    )(x.reshape(B * S, E).astype(jnp.float32), *stacked)

    return out2.reshape(B, S, E)


def init_layer_params(key, embedding_dim):
    """Deterministic synthetic weights for one SelfAttentionBlock.

    Linear weights stored as (in_features, out_features) so the kernel computes
    y = x @ W + b.  Per-head Q/K/V weights are packed column-wise into (E, E)
    (== torch.cat of per-head outputs in MultiHeadAttention).
    """
    E = embedding_dim
    F = 4 * E
    keys = jax.random.split(key, 8)
    scl = 0.1
    wq = scl * jax.random.normal(keys[0], (E, E), jnp.float32)
    wk = scl * jax.random.normal(keys[1], (E, E), jnp.float32)
    wv = scl * jax.random.normal(keys[2], (E, E), jnp.float32)
    bq = scl * jax.random.normal(keys[3], (1, E), jnp.float32)
    bk = scl * jax.random.normal(keys[4], (1, E), jnp.float32)
    bv = scl * jax.random.normal(keys[5], (1, E), jnp.float32)
    g1 = jnp.ones((1, E), jnp.float32)
    be1 = jnp.zeros((1, E), jnp.float32)
    w1 = scl * jax.random.normal(keys[6], (E, F), jnp.float32)
    b1 = jnp.zeros((1, F), jnp.float32)
    w2 = scl * jax.random.normal(keys[7], (F, E), jnp.float32)
    b2 = jnp.zeros((1, E), jnp.float32)
    g2 = jnp.ones((1, E), jnp.float32)
    be2 = jnp.zeros((1, E), jnp.float32)
    return (wq, bq, wk, bk, wv, bv, g1, be1, w1, b1, w2, b2, g2, be2)


def reference_encoder(x, layer_params, *, num_heads):
    """Pure-JAX reference mirroring the PyTorch forward, for verification."""
    E = x.shape[-1]
    head_dim = E // num_heads
    for (wq, bq, wk, bk, wv, bv, g1, be1, w1, b1, w2, b2, g2, be2) in layer_params:
        q = x @ wq + bq
        k = x @ wk + bk
        v = x @ wv + bv
        outs = []
        for h in range(num_heads):
            lo, hi = h * head_dim, (h + 1) * head_dim
            s = jnp.einsum("bsd,btd->bst", q[..., lo:hi], k[..., lo:hi]) / jnp.sqrt(
                jnp.float32(head_dim))
            p = jax.nn.softmax(s, axis=-1)
            outs.append(jnp.einsum("bst,btd->bsd", p, v[..., lo:hi]))
        attn = jnp.concatenate(outs, axis=-1)

        h1 = x + attn
        mu = jnp.mean(h1, -1, keepdims=True)
        var = jnp.mean((h1 - mu) ** 2, -1, keepdims=True)
        n1 = (h1 - mu) / jnp.sqrt(var + 1e-5) * g1 + be1

        ff = jnp.maximum(n1 @ w1 + b1, 0.0) @ w2 + b2
        h2 = n1 + ff
        mu2 = jnp.mean(h2, -1, keepdims=True)
        var2 = jnp.mean((h2 - mu2) ** 2, -1, keepdims=True)
        x = (h2 - mu2) / jnp.sqrt(var2 + 1e-5) * g2 + be2
    return x


if __name__ == "__main__":
    # Small shapes consistent with the module's forward:
    # x: (batch=2, seq=8, embedding_dim=32), num_heads=4, num_layers=2
    B, S, E = 2, 8, 32
    num_heads = 4
    num_layers = 2

    key = jax.random.PRNGKey(0)
    key_x, *layer_keys = jax.random.split(key, num_layers + 1)
    x = jax.random.normal(key_x, (B, S, E), jnp.float32)
    layer_params = [init_layer_params(k, E) for k in layer_keys]

    ref = reference_encoder(x, layer_params, num_heads=num_heads)

    # f32 matmul operands: tight check (tolerance covers the approx softmax
    # reciprocal only; LayerNorm now uses exact centered variance).
    out = transformer_encoder(x, layer_params, num_heads=num_heads,
                              matmul_dtype=jnp.float32)
    out = jax.block_until_ready(out)
    assert out.shape == (B, S, E)
    assert jnp.allclose(out, ref, atol=5e-3, rtol=5e-3), "f32 kernel mismatch"

    # Default path: bf16 matmul operands / weight streaming, f32 accumulate.
    out_bf16 = transformer_encoder(x, layer_params, num_heads=num_heads)
    out_bf16 = jax.block_until_ready(out_bf16)
    assert jnp.allclose(out_bf16, ref, atol=5e-2, rtol=5e-2), "bf16 kernel mismatch"

    print("KERNEL_OK")
</pallas_src>

<mosaic_0001>
module attributes {stable_mosaic.version = 11 : i64} {
  func.func @_encoder_stack_kernel(%arg0: i32, %arg1: i32, %arg2: memref<16x32xf32, #tpu.memory_space<any>>, %arg3: memref<1x32x32xf32, #tpu.memory_space<vmem>>, %arg4: memref<1x1x32xf32, #tpu.memory_space<vmem>>, %arg5: memref<1x32x32xf32, #tpu.memory_space<vmem>>, %arg6: memref<1x1x32xf32, #tpu.memory_space<vmem>>, %arg7: memref<1x32x32xf32, #tpu.memory_space<vmem>>, %arg8: memref<1x1x32xf32, #tpu.memory_space<vmem>>, %arg9: memref<1x1x32xf32, #tpu.memory_space<vmem>>, %arg10: memref<1x1x32xf32, #tpu.memory_space<vmem>>, %arg11: memref<1x32x128xf32, #tpu.memory_space<vmem>>, %arg12: memref<1x1x128xf32, #tpu.memory_space<vmem>>, %arg13: memref<1x128x32xf32, #tpu.memory_space<vmem>>, %arg14: memref<1x1x32xf32, #tpu.memory_space<vmem>>, %arg15: memref<1x1x32xf32, #tpu.memory_space<vmem>>, %arg16: memref<1x1x32xf32, #tpu.memory_space<vmem>>, %arg17: memref<16x32xf32, #tpu.memory_space<vmem>>, %arg18: memref<16x32xf32, #tpu.memory_space<vmem>>, %arg19: memref<!tpu.dma_semaphore, #tpu.memory_space<semaphore_mem>>) attributes {dimension_semantics = [#tpu.dimension_semantics<parallel>, #tpu.dimension_semantics<arbitrary>], iteration_bounds = array<i64: 1, 2>, scalar_prefetch = 0 : i64, scratch_operands = 2 : i64, tpu.core_type = #tpu.core_type<tc>, window_params = [{}, {transform_indices = @transform_1, window_bounds = array<i64: 1, 32, 32>}, {transform_indices = @transform_2, window_bounds = array<i64: 1, 1, 32>}, {transform_indices = @transform_3, window_bounds = array<i64: 1, 32, 32>}, {transform_indices = @transform_4, window_bounds = array<i64: 1, 1, 32>}, {transform_indices = @transform_5, window_bounds = array<i64: 1, 32, 32>}, {transform_indices = @transform_6, window_bounds = array<i64: 1, 1, 32>}, {transform_indices = @transform_7, window_bounds = array<i64: 1, 1, 32>}, {transform_indices = @transform_8, window_bounds = array<i64: 1, 1, 32>}, {transform_indices = @transform_9, window_bounds = array<i64: 1, 32, 128>}, {transform_indices = @transform_10, window_bounds = array<i64: 1, 1, 128>}, {transform_indices = @transform_11, window_bounds = array<i64: 1, 128, 32>}, {transform_indices = @transform_12, window_bounds = array<i64: 1, 1, 32>}, {transform_indices = @transform_13, window_bounds = array<i64: 1, 1, 32>}, {transform_indices = @transform_14, window_bounds = array<i64: 1, 1, 32>}, {transform_indices = @transform_15, window_bounds = array<i64: 16, 32>}]} {
    %c0_i32 = arith.constant 0 : i32
    %0 = arith.cmpi eq, %arg1, %c0_i32 : i32
    %1 = arith.extui %0 : i1 to i32
    %c0_i32_0 = arith.constant 0 : i32
    %2 = arith.cmpi ne, %1, %c0_i32_0 : i32
    scf.if %2 {
      %c16_i32 = arith.constant 16 : i32
      %140 = arith.muli %arg0, %c16_i32 : i32
      %c0_i32_68 = arith.constant 0 : i32
      %141 = tpu.memref_slice %arg2[%140, %c0_i32_68] : memref<16x32xf32, #tpu.memory_space<any>> -> memref<16x32xf32, #tpu.memory_space<any>>
      tpu.enqueue_dma source(%141 : memref<16x32xf32, #tpu.memory_space<any>>) target(%arg18 : memref<16x32xf32, #tpu.memory_space<vmem>>) target_semaphore(%arg19 : memref<!tpu.dma_semaphore, #tpu.memory_space<semaphore_mem>>)
      %c0_i32_69 = arith.constant 0 : i32
      %142 = tpu.memref_slice %arg2[%140, %c0_i32_69] : memref<16x32xf32, #tpu.memory_space<any>> -> memref<16x32xf32, #tpu.memory_space<any>>
      tpu.wait_dma2 semaphore(%arg19 : memref<!tpu.dma_semaphore, #tpu.memory_space<semaphore_mem>>) src(%142 : memref<16x32xf32, #tpu.memory_space<any>>) dst(%arg18 : memref<16x32xf32, #tpu.memory_space<vmem>>)
    } else {
    }
    %c0 = arith.constant 0 : index
    %c0_1 = arith.constant 0 : index
    %3 = vector.load %arg18[%c0, %c0_1] : memref<16x32xf32, #tpu.memory_space<vmem>>, vector<16x32xf32>
    %c0_2 = arith.constant 0 : index
    %c0_3 = arith.constant 0 : index
    %c0_4 = arith.constant 0 : index
    %4 = vector.load %arg3[%c0_2, %c0_3, %c0_4] : memref<1x32x32xf32, #tpu.memory_space<vmem>>, vector<1x32x32xf32>
    %5 = vector.shape_cast %4 : vector<1x32x32xf32> to vector<32x32xf32>
    %cst = arith.constant dense<0.000000e+00> : vector<16x32xf32>
    %6 = tpu.matmul %3, %5, %cst {dimension_numbers = #tpu.dot_dimension_numbers<[1], [0], [0], [1], [0, 0, 1, 1], [], []>} : vector<16x32xf32>, vector<32x32xf32>, vector<16x32xf32> -> vector<16x32xf32>
    %c0_5 = arith.constant 0 : index
    %c0_6 = arith.constant 0 : index
    %c0_7 = arith.constant 0 : index
    %7 = vector.load %arg4[%c0_5, %c0_6, %c0_7] : memref<1x1x32xf32, #tpu.memory_space<vmem>>, vector<1x1x32xf32>
    %8 = vector.shape_cast %7 : vector<1x1x32xf32> to vector<1x32xf32>
    %9 = vector.broadcast %8 : vector<1x32xf32> to vector<16x32xf32>
    %10 = arith.addf %6, %9 : vector<16x32xf32>
    %cst_8 = arith.constant 8.000000e+00 : f32
    %11 = math.sqrt %cst_8 : f32
    %cst_9 = arith.constant 1.000000e+00 : f32
    %12 = arith.divf %cst_9, %11 : f32
    %13 = vector.broadcast %12 : f32 to vector<16x32xf32>
    %14 = arith.mulf %10, %13 : vector<16x32xf32>
    %c0_10 = arith.constant 0 : index
    %c0_11 = arith.constant 0 : index
    %c0_12 = arith.constant 0 : index
    %15 = vector.load %arg5[%c0_10, %c0_11, %c0_12] : memref<1x32x32xf32, #tpu.memory_space<vmem>>, vector<1x32x32xf32>
    %16 = vector.shape_cast %15 : vector<1x32x32xf32> to vector<32x32xf32>
    %cst_13 = arith.constant dense<0.000000e+00> : vector<16x32xf32>
    %17 = tpu.matmul %3, %16, %cst_13 {dimension_numbers = #tpu.dot_dimension_numbers<[1], [0], [0], [1], [0, 0, 1, 1], [], []>} : vector<16x32xf32>, vector<32x32xf32>, vector<16x32xf32> -> vector<16x32xf32>
    %c0_14 = arith.constant 0 : index
    %c0_15 = arith.constant 0 : index
    %c0_16 = arith.constant 0 : index
    %18 = vector.load %arg6[%c0_14, %c0_15, %c0_16] : memref<1x1x32xf32, #tpu.memory_space<vmem>>, vector<1x1x32xf32>
    %19 = vector.shape_cast %18 : vector<1x1x32xf32> to vector<1x32xf32>
    %20 = vector.broadcast %19 : vector<1x32xf32> to vector<16x32xf32>
    %21 = arith.addf %17, %20 : vector<16x32xf32>
    %c0_17 = arith.constant 0 : index
    %c0_18 = arith.constant 0 : index
    %c0_19 = arith.constant 0 : index
    %22 = vector.load %arg7[%c0_17, %c0_18, %c0_19] : memref<1x32x32xf32, #tpu.memory_space<vmem>>, vector<1x32x32xf32>
    %23 = vector.shape_cast %22 : vector<1x32x32xf32> to vector<32x32xf32>
    %cst_20 = arith.constant dense<0.000000e+00> : vector<16x32xf32>
    %24 = tpu.matmul %3, %23, %cst_20 {dimension_numbers = #tpu.dot_dimension_numbers<[1], [0], [0], [1], [0, 0, 1, 1], [], []>} : vector<16x32xf32>, vector<32x32xf32>, vector<16x32xf32> -> vector<16x32xf32>
    %c0_21 = arith.constant 0 : index
    %c0_22 = arith.constant 0 : index
    %c0_23 = arith.constant 0 : index
    %25 = vector.load %arg8[%c0_21, %c0_22, %c0_23] : memref<1x1x32xf32, #tpu.memory_space<vmem>>, vector<1x1x32xf32>
    %26 = vector.shape_cast %25 : vector<1x1x32xf32> to vector<1x32xf32>
    %27 = vector.broadcast %26 : vector<1x32xf32> to vector<16x32xf32>
    %28 = arith.addf %24, %27 : vector<16x32xf32>
    %29 = vector.shape_cast %14 : vector<16x32xf32> to vector<2x8x32xf32>
    %30 = vector.extract_strided_slice %29 {offsets = [0, 0, 0], sizes = [2, 8, 8], strides = [1, 1, 1]} : vector<2x8x32xf32> to vector<2x8x8xf32>
    %31 = vector.extract_strided_slice %29 {offsets = [0, 0, 8], sizes = [2, 8, 8], strides = [1, 1, 1]} : vector<2x8x32xf32> to vector<2x8x8xf32>
    %32 = vector.extract_strided_slice %29 {offsets = [0, 0, 16], sizes = [2, 8, 8], strides = [1, 1, 1]} : vector<2x8x32xf32> to vector<2x8x8xf32>
    %33 = vector.extract_strided_slice %29 {offsets = [0, 0, 24], sizes = [2, 8, 8], strides = [1, 1, 1]} : vector<2x8x32xf32> to vector<2x8x8xf32>
    %34 = tpu.concatenate %30, %31, %32, %33 in 0 : vector<2x8x8xf32>, vector<2x8x8xf32>, vector<2x8x8xf32>, vector<2x8x8xf32> -> vector<8x8x8xf32>
    %35 = vector.shape_cast %21 : vector<16x32xf32> to vector<2x8x32xf32>
    %36 = vector.extract_strided_slice %35 {offsets = [0, 0, 0], sizes = [2, 8, 8], strides = [1, 1, 1]} : vector<2x8x32xf32> to vector<2x8x8xf32>
    %37 = vector.extract_strided_slice %35 {offsets = [0, 0, 8], sizes = [2, 8, 8], strides = [1, 1, 1]} : vector<2x8x32xf32> to vector<2x8x8xf32>
    %38 = vector.extract_strided_slice %35 {offsets = [0, 0, 16], sizes = [2, 8, 8], strides = [1, 1, 1]} : vector<2x8x32xf32> to vector<2x8x8xf32>
    %39 = vector.extract_strided_slice %35 {offsets = [0, 0, 24], sizes = [2, 8, 8], strides = [1, 1, 1]} : vector<2x8x32xf32> to vector<2x8x8xf32>
    %40 = tpu.concatenate %36, %37, %38, %39 in 0 : vector<2x8x8xf32>, vector<2x8x8xf32>, vector<2x8x8xf32>, vector<2x8x8xf32> -> vector<8x8x8xf32>
    %41 = vector.shape_cast %28 : vector<16x32xf32> to vector<2x8x32xf32>
    %42 = vector.extract_strided_slice %41 {offsets = [0, 0, 0], sizes = [2, 8, 8], strides = [1, 1, 1]} : vector<2x8x32xf32> to vector<2x8x8xf32>
    %43 = vector.extract_strided_slice %41 {offsets = [0, 0, 8], sizes = [2, 8, 8], strides = [1, 1, 1]} : vector<2x8x32xf32> to vector<2x8x8xf32>
    %44 = vector.extract_strided_slice %41 {offsets = [0, 0, 16], sizes = [2, 8, 8], strides = [1, 1, 1]} : vector<2x8x32xf32> to vector<2x8x8xf32>
    %45 = vector.extract_strided_slice %41 {offsets = [0, 0, 24], sizes = [2, 8, 8], strides = [1, 1, 1]} : vector<2x8x32xf32> to vector<2x8x8xf32>
    %46 = tpu.concatenate %42, %43, %44, %45 in 0 : vector<2x8x8xf32>, vector<2x8x8xf32>, vector<2x8x8xf32>, vector<2x8x8xf32> -> vector<8x8x8xf32>
    "tpu.trace_start"() <{level = 10 : i32, message = "gqd,gkd->gqk"}> : () -> ()
    %cst_24 = arith.constant dense<0.000000e+00> : vector<8x8x8xf32>
    %47 = tpu.matmul %34, %40, %cst_24 {dimension_numbers = #tpu.dot_dimension_numbers<[2], [2], [1], [1], [0, 0, 0, 1, 1, 1], [0], [0]>} : vector<8x8x8xf32>, vector<8x8x8xf32>, vector<8x8x8xf32> -> vector<8x8x8xf32>
    "tpu.trace_stop"() : () -> ()
    %cst_25 = arith.constant dense<0xFF800000> : vector<8x8xf32>
    %48 = vector.multi_reduction <maximumf>, %47, %cst_25 [2] : vector<8x8x8xf32> to vector<8x8xf32>
    %49 = vector.shape_cast %48 : vector<8x8xf32> to vector<8x8x1xf32>
    %50 = vector.broadcast %49 : vector<8x8x1xf32> to vector<8x8x8xf32>
    %51 = arith.subf %47, %50 : vector<8x8x8xf32>
    %52 = math.exp %51 : vector<8x8x8xf32>
    %cst_26 = arith.constant dense<0.000000e+00> : vector<8x8xf32>
    %53 = vector.multi_reduction <add>, %52, %cst_26 [2] : vector<8x8x8xf32> to vector<8x8xf32>
    %54 = vector.shape_cast %53 : vector<8x8xf32> to vector<8x8x1xf32>
    %55 = tpu.reciprocal %54 {approx = true} : vector<8x8x1xf32> -> vector<8x8x1xf32>
    %56 = vector.broadcast %55 : vector<8x8x1xf32> to vector<8x8x8xf32>
    %57 = arith.mulf %52, %56 : vector<8x8x8xf32>
    "tpu.trace_start"() <{level = 10 : i32, message = "gqk,gkd->gqd"}> : () -> ()
    %cst_27 = arith.constant dense<0.000000e+00> : vector<8x8x8xf32>
    %58 = tpu.matmul %57, %46, %cst_27 {dimension_numbers = #tpu.dot_dimension_numbers<[2], [1], [1], [2], [0, 0, 0, 1, 1, 2], [0], [0]>} : vector<8x8x8xf32>, vector<8x8x8xf32>, vector<8x8x8xf32> -> vector<8x8x8xf32>
    "tpu.trace_stop"() : () -> ()
    %59 = vector.shape_cast %58 : vector<8x8x8xf32> to vector<4x2x8x8xf32>
    %60 = vector.extract_strided_slice %59 {offsets = [0, 0, 0, 0], sizes = [1, 2, 8, 8], strides = [1, 1, 1, 1]} : vector<4x2x8x8xf32> to vector<1x2x8x8xf32>
    %61 = vector.shape_cast %60 : vector<1x2x8x8xf32> to vector<2x8x8xf32>
    %62 = vector.extract_strided_slice %59 {offsets = [1, 0, 0, 0], sizes = [1, 2, 8, 8], strides = [1, 1, 1, 1]} : vector<4x2x8x8xf32> to vector<1x2x8x8xf32>
    %63 = vector.shape_cast %62 : vector<1x2x8x8xf32> to vector<2x8x8xf32>
    %64 = vector.extract_strided_slice %59 {offsets = [2, 0, 0, 0], sizes = [1, 2, 8, 8], strides = [1, 1, 1, 1]} : vector<4x2x8x8xf32> to vector<1x2x8x8xf32>
    %65 = vector.shape_cast %64 : vector<1x2x8x8xf32> to vector<2x8x8xf32>
    %66 = vector.extract_strided_slice %59 {offsets = [3, 0, 0, 0], sizes = [1, 2, 8, 8], strides = [1, 1, 1, 1]} : vector<4x2x8x8xf32> to vector<1x2x8x8xf32>
    %67 = vector.shape_cast %66 : vector<1x2x8x8xf32> to vector<2x8x8xf32>
    %68 = tpu.concatenate %61, %63, %65, %67 in 2 : vector<2x8x8xf32>, vector<2x8x8xf32>, vector<2x8x8xf32>, vector<2x8x8xf32> -> vector<2x8x32xf32>
    %69 = vector.shape_cast %68 : vector<2x8x32xf32> to vector<16x32xf32>
    %70 = arith.addf %3, %69 : vector<16x32xf32>
    %c0_28 = arith.constant 0 : index
    %c0_29 = arith.constant 0 : index
    %c0_30 = arith.constant 0 : index
    %71 = vector.load %arg9[%c0_28, %c0_29, %c0_30] : memref<1x1x32xf32, #tpu.memory_space<vmem>>, vector<1x1x32xf32>
    %72 = vector.shape_cast %71 : vector<1x1x32xf32> to vector<1x32xf32>
    %c0_31 = arith.constant 0 : index
    %c0_32 = arith.constant 0 : index
    %c0_33 = arith.constant 0 : index
    %73 = vector.load %arg10[%c0_31, %c0_32, %c0_33] : memref<1x1x32xf32, #tpu.memory_space<vmem>>, vector<1x1x32xf32>
    %74 = vector.shape_cast %73 : vector<1x1x32xf32> to vector<1x32xf32>
    %cst_34 = arith.constant dense<0.000000e+00> : vector<16xf32>
    %75 = vector.multi_reduction <add>, %70, %cst_34 [1] : vector<16x32xf32> to vector<16xf32>
    %76 = vector.shape_cast %75 : vector<16xf32> to vector<16x1xf32>
    %cst_35 = arith.constant 3.200000e+01 : f32
    %77 = vector.broadcast %cst_35 : f32 to vector<16x1xf32>
    %78 = arith.divf %76, %77 : vector<16x1xf32>
    %79 = vector.broadcast %78 : vector<16x1xf32> to vector<16x32xf32>
    %80 = arith.subf %70, %79 : vector<16x32xf32>
    %81 = arith.mulf %80, %80 : vector<16x32xf32>
    %cst_36 = arith.constant dense<0.000000e+00> : vector<16xf32>
    %82 = vector.multi_reduction <add>, %81, %cst_36 [1] : vector<16x32xf32> to vector<16xf32>
    %83 = vector.shape_cast %82 : vector<16xf32> to vector<16x1xf32>
    %cst_37 = arith.constant 3.200000e+01 : f32
    %84 = vector.broadcast %cst_37 : f32 to vector<16x1xf32>
    %85 = arith.divf %83, %84 : vector<16x1xf32>
    %cst_38 = arith.constant 9.99999974E-6 : f32
    %86 = vector.broadcast %cst_38 : f32 to vector<16x1xf32>
    %87 = arith.addf %85, %86 : vector<16x1xf32>
    %88 = math.rsqrt %87 : vector<16x1xf32>
    %89 = vector.broadcast %88 : vector<16x1xf32> to vector<16x32xf32>
    %90 = arith.mulf %80, %89 : vector<16x32xf32>
    %91 = vector.broadcast %72 : vector<1x32xf32> to vector<16x32xf32>
    %92 = arith.mulf %90, %91 : vector<16x32xf32>
    %93 = vector.broadcast %74 : vector<1x32xf32> to vector<16x32xf32>
    %94 = arith.addf %92, %93 : vector<16x32xf32>
    %c0_39 = arith.constant 0 : index
    %c0_40 = arith.constant 0 : index
    %c0_41 = arith.constant 0 : index
    %95 = vector.load %arg11[%c0_39, %c0_40, %c0_41] : memref<1x32x128xf32, #tpu.memory_space<vmem>>, vector<1x32x128xf32>
    %96 = vector.shape_cast %95 : vector<1x32x128xf32> to vector<32x128xf32>
    %cst_42 = arith.constant dense<0.000000e+00> : vector<16x128xf32>
    %97 = tpu.matmul %94, %96, %cst_42 {dimension_numbers = #tpu.dot_dimension_numbers<[1], [0], [0], [1], [0, 0, 1, 1], [], []>} : vector<16x32xf32>, vector<32x128xf32>, vector<16x128xf32> -> vector<16x128xf32>
    %c0_43 = arith.constant 0 : index
    %c0_44 = arith.constant 0 : index
    %c0_45 = arith.constant 0 : index
    %98 = vector.load %arg12[%c0_43, %c0_44, %c0_45] : memref<1x1x128xf32, #tpu.memory_space<vmem>>, vector<1x1x128xf32>
    %99 = vector.shape_cast %98 : vector<1x1x128xf32> to vector<1x128xf32>
    %100 = vector.broadcast %99 : vector<1x128xf32> to vector<16x128xf32>
    %101 = arith.addf %97, %100 : vector<16x128xf32>
    %cst_46 = arith.constant 0.000000e+00 : f32
    %102 = vector.broadcast %cst_46 : f32 to vector<16x128xf32>
    %103 = arith.maximumf %101, %102 : vector<16x128xf32>
    %c0_47 = arith.constant 0 : index
    %c0_48 = arith.constant 0 : index
    %c0_49 = arith.constant 0 : index
    %104 = vector.load %arg13[%c0_47, %c0_48, %c0_49] : memref<1x128x32xf32, #tpu.memory_space<vmem>>, vector<1x128x32xf32>
    %105 = vector.shape_cast %104 : vector<1x128x32xf32> to vector<128x32xf32>
    %cst_50 = arith.constant dense<0.000000e+00> : vector<16x32xf32>
    %106 = tpu.matmul %103, %105, %cst_50 {dimension_numbers = #tpu.dot_dimension_numbers<[1], [0], [0], [1], [0, 0, 1, 1], [], []>} : vector<16x128xf32>, vector<128x32xf32>, vector<16x32xf32> -> vector<16x32xf32>
    %c0_51 = arith.constant 0 : index
    %c0_52 = arith.constant 0 : index
    %c0_53 = arith.constant 0 : index
    %107 = vector.load %arg14[%c0_51, %c0_52, %c0_53] : memref<1x1x32xf32, #tpu.memory_space<vmem>>, vector<1x1x32xf32>
    %108 = vector.shape_cast %107 : vector<1x1x32xf32> to vector<1x32xf32>
    %109 = vector.broadcast %108 : vector<1x32xf32> to vector<16x32xf32>
    %110 = arith.addf %106, %109 : vector<16x32xf32>
    %111 = arith.addf %94, %110 : vector<16x32xf32>
    %c0_54 = arith.constant 0 : index
    %c0_55 = arith.constant 0 : index
    %c0_56 = arith.constant 0 : index
    %112 = vector.load %arg15[%c0_54, %c0_55, %c0_56] : memref<1x1x32xf32, #tpu.memory_space<vmem>>, vector<1x1x32xf32>
    %113 = vector.shape_cast %112 : vector<1x1x32xf32> to vector<1x32xf32>
    %c0_57 = arith.constant 0 : index
    %c0_58 = arith.constant 0 : index
    %c0_59 = arith.constant 0 : index
    %114 = vector.load %arg16[%c0_57, %c0_58, %c0_59] : memref<1x1x32xf32, #tpu.memory_space<vmem>>, vector<1x1x32xf32>
    %115 = vector.shape_cast %114 : vector<1x1x32xf32> to vector<1x32xf32>
    %cst_60 = arith.constant dense<0.000000e+00> : vector<16xf32>
    %116 = vector.multi_reduction <add>, %111, %cst_60 [1] : vector<16x32xf32> to vector<16xf32>
    %117 = vector.shape_cast %116 : vector<16xf32> to vector<16x1xf32>
    %cst_61 = arith.constant 3.200000e+01 : f32
    %118 = vector.broadcast %cst_61 : f32 to vector<16x1xf32>
    %119 = arith.divf %117, %118 : vector<16x1xf32>
    %120 = vector.broadcast %119 : vector<16x1xf32> to vector<16x32xf32>
    %121 = arith.subf %111, %120 : vector<16x32xf32>
    %122 = arith.mulf %121, %121 : vector<16x32xf32>
    %cst_62 = arith.constant dense<0.000000e+00> : vector<16xf32>
    %123 = vector.multi_reduction <add>, %122, %cst_62 [1] : vector<16x32xf32> to vector<16xf32>
    %124 = vector.shape_cast %123 : vector<16xf32> to vector<16x1xf32>
    %cst_63 = arith.constant 3.200000e+01 : f32
    %125 = vector.broadcast %cst_63 : f32 to vector<16x1xf32>
    %126 = arith.divf %124, %125 : vector<16x1xf32>
    %cst_64 = arith.constant 9.99999974E-6 : f32
    %127 = vector.broadcast %cst_64 : f32 to vector<16x1xf32>
    %128 = arith.addf %126, %127 : vector<16x1xf32>
    %129 = math.rsqrt %128 : vector<16x1xf32>
    %130 = vector.broadcast %129 : vector<16x1xf32> to vector<16x32xf32>
    %131 = arith.mulf %121, %130 : vector<16x32xf32>
    %132 = vector.broadcast %113 : vector<1x32xf32> to vector<16x32xf32>
    %133 = arith.mulf %131, %132 : vector<16x32xf32>
    %134 = vector.broadcast %115 : vector<1x32xf32> to vector<16x32xf32>
    %135 = arith.addf %133, %134 : vector<16x32xf32>
    %c0_65 = arith.constant 0 : index
    %c0_66 = arith.constant 0 : index
    %136 = vector.load %arg18[%c0_65, %c0_66] : memref<16x32xf32, #tpu.memory_space<vmem>>, vector<16x32xf32>
    tpu.vector_store %arg18[%c0_65, %c0_66], %135 {strides = array<i32>} : memref<16x32xf32, #tpu.memory_space<vmem>>, vector<16x32xf32>,
    %c1_i32 = arith.constant 1 : i32
    %137 = arith.cmpi eq, %arg1, %c1_i32 : i32
    %138 = arith.extui %137 : i1 to i32
    %c0_i32_67 = arith.constant 0 : i32
    %139 = arith.cmpi ne, %138, %c0_i32_67 : i32
    scf.if %139 {
      %c0_68 = arith.constant 0 : index
      %c0_69 = arith.constant 0 : index
      %140 = vector.load %arg17[%c0_68, %c0_69] : memref<16x32xf32, #tpu.memory_space<vmem>>, vector<16x32xf32>
      tpu.vector_store %arg17[%c0_68, %c0_69], %135 {strides = array<i32>} : memref<16x32xf32, #tpu.memory_space<vmem>>, vector<16x32xf32>,
    } else {
    }
    return
  }
  func.func @transform_1(%arg0: i32, %arg1: i32) -> (i32, i32, i32) {
    %c0_i32 = arith.constant 0 : i32
    %c0_i32_0 = arith.constant 0 : i32
    %c0_i32_1 = arith.constant 0 : i32
    return %arg1, %c0_i32, %c0_i32_0 : i32, i32, i32
  }
  func.func @transform_2(%arg0: i32, %arg1: i32) -> (i32, i32, i32) {
    %c0_i32 = arith.constant 0 : i32
    %c0_i32_0 = arith.constant 0 : i32
    %c0_i32_1 = arith.constant 0 : i32
    return %arg1, %c0_i32, %c0_i32_0 : i32, i32, i32
  }
  func.func @transform_3(%arg0: i32, %arg1: i32) -> (i32, i32, i32) {
    %c0_i32 = arith.constant 0 : i32
    %c0_i32_0 = arith.constant 0 : i32
    %c0_i32_1 = arith.constant 0 : i32
    return %arg1, %c0_i32, %c0_i32_0 : i32, i32, i32
  }
  func.func @transform_4(%arg0: i32, %arg1: i32) -> (i32, i32, i32) {
    %c0_i32 = arith.constant 0 : i32
    %c0_i32_0 = arith.constant 0 : i32
    %c0_i32_1 = arith.constant 0 : i32
    return %arg1, %c0_i32, %c0_i32_0 : i32, i32, i32
  }
  func.func @transform_5(%arg0: i32, %arg1: i32) -> (i32, i32, i32) {
    %c0_i32 = arith.constant 0 : i32
    %c0_i32_0 = arith.constant 0 : i32
    %c0_i32_1 = arith.constant 0 : i32
    return %arg1, %c0_i32, %c0_i32_0 : i32, i32, i32
  }
  func.func @transform_6(%arg0: i32, %arg1: i32) -> (i32, i32, i32) {
    %c0_i32 = arith.constant 0 : i32
    %c0_i32_0 = arith.constant 0 : i32
    %c0_i32_1 = arith.constant 0 : i32
    return %arg1, %c0_i32, %c0_i32_0 : i32, i32, i32
  }
  func.func @transform_7(%arg0: i32, %arg1: i32) -> (i32, i32, i32) {
    %c0_i32 = arith.constant 0 : i32
    %c0_i32_0 = arith.constant 0 : i32
    %c0_i32_1 = arith.constant 0 : i32
    return %arg1, %c0_i32, %c0_i32_0 : i32, i32, i32
  }
  func.func @transform_8(%arg0: i32, %arg1: i32) -> (i32, i32, i32) {
    %c0_i32 = arith.constant 0 : i32
    %c0_i32_0 = arith.constant 0 : i32
    %c0_i32_1 = arith.constant 0 : i32
    return %arg1, %c0_i32, %c0_i32_0 : i32, i32, i32
  }
  func.func @transform_9(%arg0: i32, %arg1: i32) -> (i32, i32, i32) {
    %c0_i32 = arith.constant 0 : i32
    %c0_i32_0 = arith.constant 0 : i32
    %c0_i32_1 = arith.constant 0 : i32
    return %arg1, %c0_i32, %c0_i32_0 : i32, i32, i32
  }
  func.func @transform_10(%arg0: i32, %arg1: i32) -> (i32, i32, i32) {
    %c0_i32 = arith.constant 0 : i32
    %c0_i32_0 = arith.constant 0 : i32
    %c0_i32_1 = arith.constant 0 : i32
    return %arg1, %c0_i32, %c0_i32_0 : i32, i32, i32
  }
  func.func @transform_11(%arg0: i32, %arg1: i32) -> (i32, i32, i32) {
    %c0_i32 = arith.constant 0 : i32
    %c0_i32_0 = arith.constant 0 : i32
    %c0_i32_1 = arith.constant 0 : i32
    return %arg1, %c0_i32, %c0_i32_0 : i32, i32, i32
  }
  func.func @transform_12(%arg0: i32, %arg1: i32) -> (i32, i32, i32) {
    %c0_i32 = arith.constant 0 : i32
    %c0_i32_0 = arith.constant 0 : i32
    %c0_i32_1 = arith.constant 0 : i32
    return %arg1, %c0_i32, %c0_i32_0 : i32, i32, i32
  }
  func.func @transform_13(%arg0: i32, %arg1: i32) -> (i32, i32, i32) {
    %c0_i32 = arith.constant 0 : i32
    %c0_i32_0 = arith.constant 0 : i32
    %c0_i32_1 = arith.constant 0 : i32
    return %arg1, %c0_i32, %c0_i32_0 : i32, i32, i32
  }
  func.func @transform_14(%arg0: i32, %arg1: i32) -> (i32, i32, i32) {
    %c0_i32 = arith.constant 0 : i32
    %c0_i32_0 = arith.constant 0 : i32
    %c0_i32_1 = arith.constant 0 : i32
    return %arg1, %c0_i32, %c0_i32_0 : i32, i32, i32
  }
  func.func @transform_15(%arg0: i32, %arg1: i32) -> (i32, i32) {
    %c0_i32 = arith.constant 0 : i32
    %c0_i32_0 = arith.constant 0 : i32
    return %arg0, %c0_i32 : i32, i32
  }
}

</mosaic_0001>

<bundles_post_ra>
// kernel: tpu_custom_call.1
= control target key start
LH: loop header
LB: loop body
LE: loop exit
PB: predicated region body
PF: predicated region fallthrough
CT: control target
= control target key end

     0   :  { %s2385_s0 = inlined_call_operand.vmem [shape: f32[16,32], index: 0, kind: input, shape index: {}]   ;;  %s2386_s1 = inlined_call_operand.vmem [shape: f32[2,32,32], index: 1, kind: input, shape index: {}]   ;;  %s2387_s2 = inlined_call_operand.vmem [shape: f32[2,1,32], index: 2, kind: input, shape index: {}]   ;;  %s2388_s3 = inlined_call_operand.vmem [shape: f32[2,32,32], index: 3, kind: input, shape index: {}]   ;;  %s2389_s4 = inlined_call_operand.vmem [shape: f32[2,1,32], index: 4, kind: input, shape index: {}]   ;;  %s2390_s5 = inlined_call_operand.vmem [shape: f32[2,32,32], index: 5, kind: input, shape index: {}]   ;;  %s2391_s6 = inlined_call_operand.vmem [shape: f32[2,1,32], index: 6, kind: input, shape index: {}]   ;;  %s2392_s7 = inlined_call_operand.vmem [shape: f32[2,1,32], index: 7, kind: input, shape index: {}]   ;;  %s2393_s8 = inlined_call_operand.vmem [shape: f32[2,1,32], index: 8, kind: input, shape index: {}]   ;;  %s2394_s9 = inlined_call_operand.vmem [shape: f32[2,32,128], index: 9, kind: input, shape index: {}]   ;;  %s2395_s10 = inlined_call_operand.vmem [shape: f32[2,1,128], index: 10, kind: input, shape index: {}]   ;;  %s2396_s11 = inlined_call_operand.vmem [shape: f32[2,128,32], index: 11, kind: input, shape index: {}]   ;;  %s2397_s12 = inlined_call_operand.vmem [shape: f32[2,1,32], index: 12, kind: input, shape index: {}]   ;;  %s2398_s13 = inlined_call_operand.vmem [shape: f32[2,1,32], index: 13, kind: input, shape index: {}]   ;;  %s2399_s14 = inlined_call_operand.vmem [shape: f32[2,1,32], index: 14, kind: input, shape index: {}]   ;;  %s2400_s15 = inlined_call_operand.hbm [shape: f32[16,32], index: 15, kind: output, shape index: {}]  }
   0x1   :  { %2405 = sst [smem:[#allocation13_spill]] %s2385_s0 }
   0x2   :  { %2406 = sst [smem:[#allocation14_spill]] %s2386_s1 }
   0x3   :  { %2407 = sst [smem:[#allocation15_spill]] %s2387_s2 }
   0x4   :  { %2408 = sst [smem:[#allocation16_spill]] %s2388_s3 }
   0x5   :  { %2409 = sst [smem:[#allocation17_spill]] %s2390_s5 }
   0x6   :  { %2410 = sst [smem:[#allocation18_spill]] %s2400_s15 }
   0x7   :  { %20 = vsyncpa [#allocation5], 0  ;;  %s2079_s18 = smov 0   ;;  %s2081_s19 = smov 0  }
   0x8   :  { %s2083_s20 = smov 0  }
   0x9 LB: > { %2411 = sst [smem:[#allocation9_spill]] %s1980_s18  ;;  %s35_s22 = sadd.s32 1, %s1984_s19  ;;  %s1988_s20 = sphi %s2083_s20, %s26_s20   ;;  %s1984_s19 = sphi %s2081_s19, %s2434_s19   ;;  %s1980_s18 = sphi %s2079_s18, %s2433_s18  }
   0xa   : > { %2412 = sst [smem:[#allocation10_spill]] %s1984_s19  ;;  %p36_p0 = scmp.ge.s32.totalorder %s35_s22, 2 }
   0xb   : > { %2413 = sst [smem:[#allocation11_spill]] %s1988_s20  ;;  %p1778_p1 = scmp.ge.s32.totalorder %s1988_s20, 1 }
   0xc   : > { %p538_p2 = scmp.lt.s32.totalorder %s1988_s20, 3  ;;  %s2436_s22 = smov (%p36_p0, %s35_s22), 0 }
   0xd   : > { %2414 = sst [smem:[#allocation12_spill]] %s2436_s22 }
   0xe   : > { %p539_p3 = pnand %p1778_p1, %p538_p2 }
   0xf   : > { %p626_p4 = scmp.lt.s32.totalorder (!%p539_p3), %s1980_s18, 1  ;;  %s2416_s1 = sld [smem:[#allocation14_spill]] (!%p539_p3) }
  0x10   : > { %542 = sbr.rel (%p539_p3) target bundleno = 1801 (0x709), region = 76  ;;  %s2417_s3 = sld [smem:[#allocation16_spill]] (!%p539_p3) }
  0x11   : > { %s2418_s5 = sld [smem:[#allocation17_spill]] (!%p539_p3) }
  0x12   : > { %s2419_s0 = sld [smem:[#allocation9_spill]] (!%p539_p3) }
  0x15   : > { %s2102_s23 = scalar_select %p626_p4, %s1980_s18, 1 }
  0x17   : > { %s1828_s24 = sshll.u32 %s2102_s23, 5  ;;  %s671_s16 = scalar_lea.vmem %s2397_s12, %s2102_s23 }
  0x18   : > { %s2112_s30 = scalar_lea.vmem %s2416_s1, %s1828_s24  ;;  %s2117_s21 = scalar_lea.vmem %s2417_s3, %s1828_s24 }
  0x19   : > { %s2126_s18 = scalar_lea.vmem %s2418_s5, %s1828_s24  ;;  %s2143_s22 = scalar_lea.vmem %s2394_s9, %s1828_s24 }
  0x1a   : > { %s1832_s5 = sshll.u32 %s2102_s23, 7  ;;  %s674_s2 = scalar_lea.vmem %s2398_s13, %s2102_s23 }
  0x1b   : > { %s2153_s28 = scalar_lea.vmem %s2396_s11, %s1832_s5  ;;  %s677_s1 = scalar_lea.vmem %s2399_s14, %s2102_s23 }
  0x1c   : > { %p1789_p5 = scmp.ne.s32.totalorder %s2419_s0, 0 }
  0x1d   : > { %s2420_s25 = sld [smem:[#allocation13_spill]] (!%p1789_p5) }
  0x1e   : > { %682 = sbr.rel (%p1789_p5) target bundleno = 41 (0x29), region = 80 }
  0x23   : > { %v695_v0 = vld [vmem:[%s2420_s25] sm:$0xff]  ;;  %v697_v1 = vld [vmem:[%s2420_s25 + $0x8] sm:$0xff] }
  0x24   : > { %696 = vst [vmem:[#allocation2] sm:$0xff] %v695_v0 }
  0x25   : > { %698 = vst [vmem:[#allocation2 + $0x8] sm:$0xff] %v697_v1 }
  0x26   : > { %704 = vsyncadd [#allocation3], 256 }
  0x27   : > { %1972 = dma.done.wait [#allocation3], 256 }
  0x28   : > { %1973 = vsyncadd [#allocation3], 4294967040 }
  0x29 PF: > { %v753_v2 = vld [vmem:[%s2117_s21 + $0x18] sm:$0xff]  ;;  %v752_v4 = vld [vmem:[%s2117_s21 + $0x10] sm:$0xff]  ;;  %v751_v6 = vld [vmem:[%s2117_s21 + $0x8] sm:$0xff]  ;;  %vm718_vm0 = vcmask 261120   ;;  %s2422_s27 = sld [smem:[#allocation15_spill]]  ;;  %vm860_vm1 = vcmask 64512   ;;  %s2424_s5 = scalar_lea.vmem %s2391_s6, %s2102_s23 }
  0x2a   : > { %v713_v3 = vld [vmem:[%s2112_s30 + $0x18] sm:$0xff]  ;;  %770 = vmatpush.msra.mxu1 %v753_v2  ;;  %v712_v5 = vld [vmem:[%s2112_s30 + $0x10] sm:$0xff]  ;;  %v711_v7 = vld [vmem:[%s2112_s30 + $0x8] sm:$0xff]  ;;  %s1990_s17 = smov 104   ;;  %s1991_s24 = smov 120   ;;  %vm1351_vm2 = vcmask 130048  }
  0x2b   : > { %737 = vmatpush.msra.mxu0 %v713_v3  ;;  %v750_v8 = vld [vmem:[%s2117_s21] sm:$0xff]  ;;  %v784_v9 = vld [vmem:[%s2126_s18 + $0x18] sm:$0xff]  ;;  %v783_v10 = vld [vmem:[%s2126_s18 + $0x10] sm:$0xff]  ;;  %s1992_s19 = smov 112   ;;  %s1993_s26 = smov 16   ;;  %vm1354_vm3 = vcmask 195584  }
  0x2c   : > { %771 = vmatpush.msra.mxu1 %v752_v4  ;;  %v710_v11 = vld [vmem:[%s2112_s30] sm:$0xff]  ;;  %1833 = vmatpush.msra.mxu3 %v784_v9  ;;  %v782_v13 = vld [vmem:[%s2126_s18 + $0x8] sm:$0xff]  ;;  %s1994_s3 = smov 8   ;;  %s1995_s15 = smov 24  }
  0x2d   : > { %738 = vmatpush.msra.mxu0 %v712_v5  ;;  %v2184_v12 = vld [vmem:[#allocation2] sm:$0xff]  ;;  %v2192_v15 = vld [vmem:[#allocation2 + $0x8] sm:$0xff]  ;;  %s2425_s21 = scalar_lea.vmem %s2392_s7, %s2102_s23 }
  0x2e   : > { %772 = vmatpush.msra.mxu1 %v751_v6  ;;  %1834 = vmatpush.msra.mxu3 %v783_v10  ;;  %v781_v14 = vld [vmem:[%s2126_s18] sm:$0xff]  ;;  %s2421_s18 = scalar_lea.vmem %s2389_s4, %s2102_s23 }
  0x2f   : > { %739 = vmatpush.msra.mxu0 %v711_v7  ;;  %v1881_v16 = vld [vmem:[%s2421_s18] ss:$0 sm:$0xff]  ;;  %s2423_s29 = scalar_lea.vmem %s2422_s27, %s2102_s23 }
  0x30   : > { %773 = vmatpush.msra.mxu1 %v750_v8  ;;  %1835 = vmatpush.msra.mxu3 %v782_v13  ;;  %v1882_v17 = vld [vmem:[%s2423_s29] ss:$0 sm:$0xff]  ;;  %s2426_s29 = scalar_lea.vmem %s2393_s8, %s2102_s23 }
  0x31   : > { %740 = vmatpush.msra.mxu0 %v710_v11  ;;  %1792 = vmatmul.msk.f32.vlgmr.msra.gmra.mxu1 %vm718_vm0, %v2184_v12  ;;  %v1883_v28 = vld [vmem:[%s2424_s5] ss:$0 sm:$0xff] }
  0x32   : > { %1790 = vmatmul.msk.f32.vlgmr.msra.gmra.mxu0 %vm718_vm0, %v2184_v12  ;;  %1836 = vmatpush.msra.mxu3 %v781_v14 }
  0x33   : > { %801 = vmatpush.msrb.mxu0 %v784_v9  ;;  %1795 = vmatmul.msk.f32.vlgmr.msra.gmra.mxu3 %vm718_vm0, %v2192_v15 }
  0x35   : > { %802 = vmatpush.msrb.mxu0 %v783_v10 }
  0x37   : > { %803 = vmatpush.msrb.mxu0 %v782_v13 }
  0x39   : > { %804 = vmatpush.msrb.mxu0 %v781_v14  ;;  %1793 = vmatmul.msk.f32.gmra.mxu1 %vm718_vm0, %v2192_v15 }
  0x3a   : > { %1791 = vmatmul.msk.f32.gmra.mxu0 %vm718_vm0, %v2192_v15 }
  0x42   : > { %1794 = vmatmul.msk.f32.vlgmr.msrb.gmra.mxu0 %vm718_vm0, %v2184_v12 }
  0xae   : > { %v775_v18 = vpop.f32.mrf.mxu1 }
  0xaf   : > { %v742_v19 = vpop.f32.mrf.mxu0  ;;  %v776_v20 = vadd.f32 %v1881_v16, %v775_v18 }
  0xb0   : > { %v743_v21 = vadd.f32 %v1882_v17, %v742_v19 }
  0xb1   : > { %836 = vrot.lane.b32.xlu1 %v776_v20, %s1990_s17  ;;  %828 = vrot.lane.b32.xlu0 %v776_v20, %s1991_s24 }
  0xb2   : > { %v748_v22 = vmul.f32 0.35355338, %v743_v21  ;;  %1796 = vmatpush.xpose.msk.msrb.mxu3 %vm860_vm1, %v776_v20 }
  0xb5   : > { %1797 = vmatmul.msk.f32.vlgmr.msrb.gmra.mxu3 %vm860_vm1, %v748_v22 }
  0xb6   : > { %v778_v23 = vpop.f32.mrf.mxu1  ;;  %v809_v29 = vpop.f32.mrf.mxu3 }
  0xb7   : > { %v745_v24 = vpop.f32.mrf.mxu0  ;;  %v779_v25 = vadd.f32 %v1881_v16, %v778_v23  ;;  %v2233_v30 = vadd.f32 %v1883_v28, %v809_v29 }
  0xb8   : > { %v746_v26 = vadd.f32 %v1882_v17, %v745_v24 }
  0xb9   : > { %834 = vrot.lane.b32.xlu2 %v779_v25, %s1992_s19  ;;  %1798 = vmatpush.xpose.msk.msra.mxu3 %vm860_vm1, %v779_v25 }
  0xba   : > { %v749_v27 = vmul.f32 0.35355338, %v746_v26  ;;  %822 = vrot.lane.b32.xlu1 %v748_v22, %s1990_s17  ;;  %814 = vrot.lane.b32.xlu0 %v748_v22, %s1991_s24 }
  0xbd   : > { %1799 = vmatmul.msk.f32.vlgmr.msra.gmra.mxu3 %vm860_vm1, %v749_v27 }
  0xbf   : > { %v806_v37 = vpop.f32.mrf.mxu0 }
  0xc0   : > { %v807_v40 = vadd.f32 %v1883_v28, %v806_v37 }
  0xc1   : > { %820 = vrot.lane.b32.xlu2 %v749_v27, %s1992_s19 }
  0xc2   : > { %832 = vrot.lane.b32.xlu0 %v776_v20, %s1992_s19  ;;  %830 = vrot.lane.b32.xlu1 %v779_v25, %s1991_s24  ;;  %v1876_v2 = vpack.i.bf16 %v2233_v30, %v807_v40 }
  0xc9   : > { %818 = vrot.lane.b32.xlu2 %v748_v22, %s1992_s19 }
  0xca   : > { %816 = vrot.lane.b32.xlu0 %v749_v27, %s1991_s24  ;;  %838 = vrot.lane.b32.xlu1 %v779_v25, %s1990_s17 }
  0xd1   : > { %824 = vrot.lane.b32.xlu2 %v749_v27, %s1990_s17 }
 0x113   : > { %v835_v31 = vpop.permute.xlu2 %834 }
 0x114   : > { %1806 = vmatpush.xpose.msk.msra.mxu2 %vm860_vm1, %v835_v31 }
 0x118   : > { %1182 = vmatpush.msrb.mxu2 %v2233_v30 }
 0x11b   : > { %v821_v32 = vpop.permute.xlu2 %820 }
 0x11c   : > { %1807 = vmatmul.msk.f32.vlgmr.msra.gmra.mxu2 %vm860_vm1, %v821_v32 }
 0x123   : > { %v837_v33 = vpop.permute.xlu1 %836  ;;  %v829_v34 = vpop.permute.xlu0 %828 }
 0x124   : > { %1800 = vmatpush.xpose.msk.msrb.mxu3 %vm860_vm1, %v829_v34  ;;  %v819_v41 = vpop.permute.xlu2 %818 }
 0x128   : > { %1808 = vmatpush.xpose.msk.msra.mxu3 %vm860_vm1, %v837_v33 }
 0x12c   : > { %v823_v35 = vpop.permute.xlu1 %822  ;;  %v815_v36 = vpop.permute.xlu0 %814 }
 0x12d   : > { %1801 = vmatmul.msk.f32.vlgmr.msrb.gmra.mxu3 %vm860_vm1, %v815_v36  ;;  %v825_v48 = vpop.permute.xlu2 %824 }
 0x134   : > { %v833_v38 = vpop.permute.xlu0 %832  ;;  %v831_v39 = vpop.permute.xlu1 %830 }
 0x135   : > { %1804 = vmatpush.xpose.msk.msrb.mxu1 %vm860_vm1, %v833_v38  ;;  %1809 = vmatmul.msk.f32.vlgmr.msra.gmra.mxu3 %vm860_vm1, %v823_v35 }
 0x136   : > { %1802 = vmatpush.xpose.msk.msra.mxu0 %vm860_vm1, %v831_v39 }
 0x138   : > { %v882_v42 = vpop.f32.mrf.mxu3  ;;  %1805 = vmatmul.msk.f32.vlgmr.msrb.gmra.mxu1 %vm860_vm1, %v819_v41 }
 0x139   : > { %1159 = vmatpush.msra.mxu1 %v807_v40  ;;  %v1053_v43 = vsel %vm860_vm1, %v882_v42, -inf }
 0x13a   : > { %1054 = vmax.xlane.f32.xlu1 %v1053_v43 }
 0x13c   : > { %v817_v44 = vpop.permute.xlu0 %816  ;;  %v839_v45 = vpop.permute.xlu1 %838 }
 0x13d   : > { %1803 = vmatmul.msk.f32.vlgmr.msra.gmra.mxu0 %vm860_vm1, %v817_v44 }
 0x13e   : > { %1810 = vmatpush.xpose.msk.msrb.mxu0 %vm860_vm1, %v839_v45 }
 0x140   : > { %v906_v46 = vpop.f32.mrf.mxu3 }
 0x141   : > { %v1056_v47 = vsel %vm860_vm1, %v906_v46, -inf }
 0x142   : > { %1057 = vmax.xlane.f32.xlu2 %v1056_v47 }
 0x145   : > { %1811 = vmatmul.msk.f32.vlgmr.msrb.gmra.mxu0 %vm860_vm1, %v825_v48 }
 0x19f   : > { %v1002_v59 = vpop.f32.mrf.mxu2 }
 0x1a0   : > { %v1068_v61 = vsel %vm860_vm1, %v1002_v59, -inf }
 0x1ad   : > { %v1055_v50 = vpop.xlane.xlu1 %1054 }
 0x1ae   : > { %v1077_v53 = vsub.f32 %v882_v42, %v1055_v50 }
 0x1b0   : > { %v930_v49 = vpop.f32.mrf.mxu3  ;;  %v1085_v58 = vmul.f32 1.442695, %v1077_v53 }
 0x1b1   : > { %v1059_v60 = vsel %vm860_vm1, %v930_v49, -inf }
 0x1b2   : > { %1890 = vpow2.f32 %v1085_v58 }
 0x1b5   : > { %v978_v51 = vpop.f32.mrf.mxu1  ;;  %v1058_v3 = vpop.xlane.xlu2 %1057 }
 0x1b6   : > { %v1065_v52 = vsel %vm860_vm1, %v978_v51, -inf  ;;  %v1078_v4 = vsub.f32 %v906_v46, %v1058_v3 }
 0x1b7   : > { %1066 = vmax.xlane.f32.xlu0 %v1065_v52 }
 0x1b8   : > { %v1026_v54 = vpop.f32.mrf.mxu3  ;;  %v1891_v63 = vpop.eup %1890  ;;  %v1087_v5 = vmul.f32 1.442695, %v1078_v4 }
 0x1b9   : > { %v1071_v55 = vsel %vm860_vm1, %v1026_v54, -inf  ;;  %v1101_v1 = vsel %vm860_vm1, %v1891_v63, 0.0 }
 0x1ba   : > { %v954_v56 = vpop.f32.mrf.mxu0  ;;  %1072 = vmax.xlane.f32.xlu2 %v1071_v55  ;;  %1892 = vpow2.f32 %v1087_v5 }
 0x1bb   : > { %v1062_v57 = vsel %vm860_vm1, %v954_v56, -inf }
 0x1bc   : > { %1063 = vmax.xlane.f32.xlu1 %v1062_v57 }
 0x1bf   : > { %1060 = vmax.xlane.f32.xlu0 %v1059_v60 }
 0x1c0   : > { %v2261_v6 = vpop.eup %1892 }
 0x1c1   : > { %v1104_v7 = vsel %vm860_vm1, %v2261_v6, 0.0 }
 0x1c2   : > { %1069 = vmax.xlane.f32.xlu2 %v1068_v61  ;;  %v1050_v62 = vpop.f32.mrf.mxu0 }
 0x1c3   : > { %v1074_v0 = vsel %vm860_vm1, %v1050_v62, -inf }
 0x1c7   : > { %1075 = vmax.xlane.f32.xlu0 %v1074_v0 }
 0x1ca   : > { %1102 = vadd.xlane.f32.xlu2 %v1101_v1 }
 0x1d5   : > { %854 = vrot.lane.b32.xlu1 %v807_v40, %s1990_s17 }
 0x1db   : > { %1877 = vrot.lane.b32.xlu0 %v1876_v2, %s1992_s19  ;;  %s2427_s19 = scalar_lea.vmem %s2395_s10, %s2102_s23 }
 0x1e2   : > { %842 = vrot.lane.b32.xlu2 %v807_v40, %s1991_s24 }
 0x205   : > { %1105 = vadd.xlane.f32.xlu0 %v1104_v7 }
 0x22a   : > { %v1067_v8 = vpop.xlane.xlu0 %1066 }
 0x22b   : > { %v1081_v9 = vsub.f32 %v978_v51, %v1067_v8 }
 0x22d   : > { %v1093_v10 = vmul.f32 1.442695, %v1081_v9  ;;  %v1073_v11 = vpop.xlane.xlu2 %1072 }
 0x22e   : > { %v1083_v28 = vsub.f32 %v1026_v54, %v1073_v11 }
 0x22f   : > { %1894 = vpow2.f32 %v1093_v10  ;;  %v1064_v13 = vpop.xlane.xlu1 %1063 }
 0x230   : > { %v1080_v18 = vsub.f32 %v954_v56, %v1064_v13  ;;  %v1097_v34 = vmul.f32 1.442695, %v1083_v28 }
 0x232   : > { %v1061_v14 = vpop.xlane.xlu0 %1060  ;;  %v1091_v24 = vmul.f32 1.442695, %v1080_v18 }
 0x233   : > { %v1079_v16 = vsub.f32 %v930_v49, %v1061_v14 }
 0x235   : > { %v1895_v17 = vpop.eup %1894  ;;  %v1089_v19 = vmul.f32 1.442695, %v1079_v16  ;;  %v1070_v20 = vpop.xlane.xlu2 %1069 }
 0x236   : > { %v1082_v21 = vsub.f32 %v1002_v59, %v1070_v20  ;;  %v1113_v22 = vsel %vm860_vm1, %v1895_v17, 0.0 }
 0x237   : > { %1896 = vpow2.f32 %v1089_v19  ;;  %1114 = vadd.xlane.f32.xlu0 %v1113_v22 }
 0x238   : > { %v1095_v23 = vmul.f32 1.442695, %v1082_v21 }
 0x23a   : > { %1898 = vpow2.f32 %v1095_v23  ;;  %v1076_v25 = vpop.xlane.xlu0 %1075 }
 0x23b   : > { %v1084_v26 = vsub.f32 %v1050_v62, %v1076_v25  ;;  %1900 = vpow2.f32 %v1091_v24 }
 0x23d   : > { %v1897_v27 = vpop.eup %1896  ;;  %v1099_v29 = vmul.f32 1.442695, %v1084_v26  ;;  %v1103_v31 = vpop.xlane.xlu2 %1102 }
 0x23e   : > { %1902 = vrcp.f32 %v1103_v31  ;;  %v1107_v32 = vsel %vm860_vm1, %v1897_v27, 0.0 }
 0x23f   : > { %1904 = vpow2.f32 %v1099_v29  ;;  %1108 = vadd.xlane.f32.xlu1 %v1107_v32 }
 0x240   : > { %v1899_v33 = vpop.eup %1898  ;;  %1906 = vpow2.f32 %v1097_v34  ;;  %v1996_v34 = vmov 32.0  }
 0x241   : > { %v1116_v35 = vsel %vm860_vm1, %v1899_v33, 0.0  ;;  %v1901_v36 = vpop.eup %1900 }
 0x242   : > { %1117 = vadd.xlane.f32.xlu0 %v1116_v35  ;;  %v1110_v41 = vsel %vm860_vm1, %v1901_v36, 0.0 }
 0x244   : > { %v1903_v37 = vpop.eup %1902 }
 0x245   : > { %v1905_v38 = vpop.eup %1904  ;;  %v1133_v39 = vmul.f32 %v1903_v37, %v1891_v63  ;;  %v843_v40 = vpop.permute.xlu2 %842 }
 0x246   : > { %1205 = vmatpush.msrb.mxu3 %v843_v40  ;;  %v1122_v42 = vsel %vm860_vm1, %v1905_v38, 0.0  ;;  %v1907_v44 = vpop.eup %1906 }
 0x247   : > { %v855_v43 = vpop.permute.xlu1 %854  ;;  %1111 = vadd.xlane.f32.xlu1 %v1110_v41  ;;  %1123 = vadd.xlane.f32.xlu2 %v1122_v42  ;;  %v1119_v48 = vsel %vm860_vm1, %v1907_v44, 0.0 }
 0x248   : > { %1812 = vmatmul.msk.f32.vlgmr.msra.gmra.mxu1 %vm860_vm1, %v1133_v39  ;;  %1297 = vmatpush.msra.mxu3 %v855_v43 }
 0x24d   : > { %v1878_v45 = vpop.permute.xlu0 %1877 }
 0x24e   : > { %v1880_v46 = vunpack.i.h.bf16 %v1878_v45  ;;  %v1879_v47 = vunpack.i.l.bf16 %v1878_v45 }
 0x24f   : > { %1120 = vadd.xlane.f32.xlu1 %v1119_v48 }
 0x250   : > { %1251 = vmatpush.msrb.mxu1 %v1879_v47  ;;  %1274 = vmatpush.msra.mxu2 %v1880_v46 }
 0x256   : > { %856 = vrot.lane.b32.xlu0 %v2233_v30, %s1990_s17 }
 0x268   : > { %844 = vrot.lane.b32.xlu1 %v2233_v30, %s1991_s24 }
 0x278   : > { %v1106_v49 = vpop.xlane.xlu0 %1105 }
 0x279   : > { %1908 = vrcp.f32 %v1106_v49  ;;  %v1425_v49 = vld [vmem:[%s2143_s22 + $0x18] sm:$0xff] }
 0x27a   : > { %1448 = vmatpush.msra.mxu1 %v1425_v49 }
 0x27f   : > { %v1909_v50 = vpop.eup %1908 }
 0x280   : > { %v1134_v51 = vmul.f32 %v1909_v50, %v2261_v6  ;;  %v1424_v50 = vld [vmem:[%s2143_s22 + $0x10] sm:$0xff] }
 0x281   : > { %1449 = vmatpush.msra.mxu1 %v1424_v50 }
 0x282   : > { %1813 = vmatmul.msk.f32.vlgmr.msrb.gmra.mxu2 %vm860_vm1, %v1134_v51  ;;  %v1423_v51 = vld [vmem:[%s2143_s22 + $0x8] sm:$0xff] }
 0x283   : > { %1450 = vmatpush.msra.mxu1 %v1423_v51 }
 0x2aa   : > { %v1115_v52 = vpop.xlane.xlu0 %1114 }
 0x2ab   : > { %1910 = vrcp.f32 %v1115_v52  ;;  %v1422_v52 = vld [vmem:[%s2143_s22] sm:$0xff] }
 0x2ac   : > { %1451 = vmatpush.msra.mxu1 %v1422_v52 }
 0x2b1   : > { %v1911_v53 = vpop.eup %1910 }
 0x2b2   : > { %v1137_v54 = vmul.f32 %v1911_v53, %v1895_v17  ;;  %v1109_v55 = vpop.xlane.xlu1 %1108 }
 0x2b3   : > { %1912 = vrcp.f32 %v1109_v55 }
 0x2b4   : > { %1816 = vmatmul.msk.f32.vlgmr.msrb.gmra.mxu1 %vm860_vm1, %v1137_v54 }
 0x2b5   : > { %v1118_v56 = vpop.xlane.xlu0 %1117 }
 0x2b6   : > { %1914 = vrcp.f32 %v1118_v56 }
 0x2b9   : > { %v1913_v57 = vpop.eup %1912 }
 0x2ba   : > { %v1135_v58 = vmul.f32 %v1913_v57, %v1897_v27  ;;  %v1112_v30 = vpop.xlane.xlu1 %1111  ;;  %v1124_v0 = vpop.xlane.xlu2 %1123 }
 0x2bc   : > { %v1915_v59 = vpop.eup %1914  ;;  %1814 = vmatmul.msk.f32.vlgmr.msrb.gmra.mxu3 %vm860_vm1, %v1135_v58 }
 0x2bd   : > { %v1138_v60 = vmul.f32 %v1915_v59, %v1899_v33  ;;  %v1475_v59 = vld [vmem:[%s2153_s28 + $0x70] sm:$0xff] }
 0x2bf   : > { %1817 = vmatmul.msk.f32.vlgmr.msra.gmra.mxu2 %vm860_vm1, %v1138_v60 }
 0x2c2   : > { %v1121_v61 = vpop.xlane.xlu1 %1120 }
 0x2c3   : > { %1916 = vrcp.f32 %v1121_v61  ;;  %v1474_v61 = vld [vmem:[%s2153_s28 + $0x68] sm:$0xff] }
 0x2c4   : > { %1918 = vrcp.f32 %v1112_v30  ;;  %v1476_v30 = vld [vmem:[%s2153_s28 + $0x78] sm:$0xff] }
 0x2c5   : > { %1920 = vrcp.f32 %v1124_v0  ;;  %v1161_v7 = vpop.f32.mrf.mxu1  ;;  %1481 = vmatpush.msrb.mxu2 %v1476_v30 }
 0x2c6   : > { %1922 = vrcp.f32 %v1996_v34  ;;  %v1461_v34 = vld [vmem:[%s2153_s28] sm:$0xff] }
 0x2c7   : > { %1482 = vmatpush.msrb.mxu2 %v1475_v59 }
 0x2c8   : > { %v857_v4 = vpop.permute.xlu0 %856 }
 0x2c9   : > { %v1917_v62 = vpop.eup %1916  ;;  %1483 = vmatpush.msrb.mxu2 %v1474_v61 }
 0x2ca   : > { %v1139_v63 = vmul.f32 %v1917_v62, %v1907_v44  ;;  %v1919_v1 = vpop.eup %1918 }
 0x2cb   : > { %v1136_v2 = vmul.f32 %v1919_v1, %v1901_v36  ;;  %v1921_v5 = vpop.eup %1920  ;;  %v1473_v1 = vld [vmem:[%s2153_s28 + $0x60] sm:$0xff] }
 0x2cc   : > { %1818 = vmatmul.msk.f32.vlgmr.msra.gmra.mxu3 %vm860_vm1, %v1139_v63  ;;  %v1140_v6 = vmul.f32 %v1921_v5, %v1905_v38  ;;  %v1923_v35 = vpop.eup %1922  ;;  %v1472_v5 = vld [vmem:[%s2153_s28 + $0x58] sm:$0xff]  ;;  %1484 = vmatpush.msrb.mxu2 %v1473_v1 }
 0x2cd   : > { %v1368_v36 = vmul.f32 32.0, %v1923_v35  ;;  %vm1372_vm4 = vweird.f32 %v1923_v35 }
 0x2ce   : > { %1485 = vmatpush.msrb.mxu2 %v1472_v5 }
 0x2da   : > { %v845_v3 = vpop.permute.xlu1 %844 }
 0x2db   : > { %1228 = vmatpush.msra.mxu0 %v845_v3  ;;  %v1884_v3 = vld [vmem:[%s2425_s21] ss:$0 sm:$0xff] }
 0x2dc   : > { %1815 = vmatmul.msk.f32.vlgmr.msra.gmra.mxu0 %vm860_vm1, %v1136_v2 }
 0x2dd   : > { %1320 = vmatpush.msrb.mxu0 %v857_v4 }
 0x2e4   : > { %1819 = vmatmul.msk.f32.vlgmr.msrb.gmra.mxu0 %vm860_vm1, %v1140_v6 }
 0x305   : > { %v1184_v10 = vpop.f32.mrf.mxu2 }
 0x331   : > { %v1253_v8 = vpop.f32.mrf.mxu1 }
 0x332   : > { %1335 = vrot.lane.b32.xlu0 %v1253_v8, %s1993_s26  ;;  %v1885_v8 = vld [vmem:[%s2426_s29] ss:$0 sm:$0xff] }
 0x33f   : > { %v1207_v9 = vpop.f32.mrf.mxu3 }
 0x340   : > { %1327 = vrot.lane.b32.xlu1 %v1207_v9, %s1994_s3  ;;  %v1471_v9 = vld [vmem:[%s2153_s28 + $0x50] sm:$0xff] }
 0x341   : > { %1486 = vmatpush.msrb.mxu2 %v1471_v9  ;;  %v1889_v9 = vld [vmem:[%s677_s1] ss:$0 sm:$0xff]  ;;  %s2428_s1 = sld [smem:[#allocation9_spill]] }
 0x342   : > { %v1276_v13 = vpop.f32.mrf.mxu2 }
 0x347   : > { %p1822_p6 = scmp.ne.s32.totalorder %s2428_s1, 1 }
 0x34f   : > { %v1299_v11 = vpop.f32.mrf.mxu3 }
 0x350   : > { %1343 = vrot.lane.b32.xlu1 %v1299_v11, %s1995_s15  ;;  %v1470_v11 = vld [vmem:[%s2153_s28 + $0x48] sm:$0xff] }
 0x351   : > { %1487 = vmatpush.msrb.mxu2 %v1470_v11 }
 0x358   : > { %1337 = vrot.lane.b32.xlu1 %v1276_v13, %s1993_s26 }
 0x359   : > { %v1230_v14 = vpop.f32.mrf.mxu0 }
 0x35a   : > { %1329 = vrot.lane.b32.xlu0 %v1230_v14, %s1994_s3  ;;  %v1469_v14 = vld [vmem:[%s2153_s28 + $0x40] sm:$0xff] }
 0x35b   : > { %1488 = vmatpush.msrb.mxu2 %v1469_v14 }
 0x361   : > { %v1322_v16 = vpop.f32.mrf.mxu0 }
 0x362   : > { %1345 = vrot.lane.b32.xlu0 %v1322_v16, %s1995_s15 }
 0x3a4   : > { %v1336_v19 = vpop.permute.xlu0 %1335 }
 0x3b2   : > { %v1328_v17 = vpop.permute.xlu1 %1327 }
 0x3b3   : > { %v1349_v18 = vsel %vm860_vm1, %v1161_v7, %v1328_v17  ;;  %v1468_v17 = vld [vmem:[%s2153_s28 + $0x38] sm:$0xff] }
 0x3b4   : > { %v1352_v20 = vsel %vm1351_vm2, %v1349_v18, %v1336_v19  ;;  %v1467_v19 = vld [vmem:[%s2153_s28 + $0x30] sm:$0xff]  ;;  %1489 = vmatpush.msrb.mxu2 %v1468_v17 }
 0x3b6   : > { %1490 = vmatpush.msrb.mxu2 %v1467_v19 }
 0x3c2   : > { %v1344_v21 = vpop.permute.xlu1 %1343 }
 0x3c3   : > { %v1355_v22 = vsel %vm1354_vm3, %v1352_v20, %v1344_v21  ;;  %v1466_v21 = vld [vmem:[%s2153_s28 + $0x28] sm:$0xff] }
 0x3c4   : > { %v1357_v23 = vadd.f32 %v1355_v22, %v2184_v12  ;;  %v1369_v12 = vsub.f32 1.0, %v1368_v36  ;;  %1491 = vmatpush.msrb.mxu2 %v1466_v21 }
 0x3c6   : > { %v1361_v24 = vsel %vm718_vm0, %v1357_v23, 0.0  ;;  %v1370_v37 = vmul.f32 %v1923_v35, %v1369_v12 }
 0x3c7   : > { %1362 = vadd.xlane.f32.xlu2 %v1361_v24 }
 0x3c8   : > { %v1371_v38 = vadd.f32 %v1923_v35, %v1370_v37 }
 0x3ca   : > { %v1338_v27 = vpop.permute.xlu1 %1337  ;;  %v2292_v39 = vsel %vm1372_vm4, %v1923_v35, %v1371_v38  ;;  %v1886_v35 = vld [vmem:[%s2427_s19] ss:$0 sm:$0xff] }
 0x3cc   : > { %v1330_v25 = vpop.permute.xlu0 %1329 }
 0x3cd   : > { %v1350_v26 = vsel %vm860_vm1, %v1184_v10, %v1330_v25  ;;  %v1464_v25 = vld [vmem:[%s2153_s28 + $0x18] sm:$0xff] }
 0x3ce   : > { %v1353_v28 = vsel %vm1351_vm2, %v1350_v26, %v1338_v27 }
 0x3d4   : > { %v1346_v29 = vpop.permute.xlu0 %1345 }
 0x3d5   : > { %v1356_v31 = vsel %vm1354_vm3, %v1353_v28, %v1346_v29 }
 0x3d6   : > { %v1358_v32 = vadd.f32 %v1356_v31, %v2192_v15 }
 0x3d8   : > { %v1364_v33 = vsel %vm718_vm0, %v1358_v32, 0.0 }
 0x3d9   : > { %1365 = vadd.xlane.f32.xlu1 %v1364_v33  ;;  %v1462_v33 = vld [vmem:[%s2153_s28 + $0x8] sm:$0xff] }
 0x43a   : > { %v1363_v40 = vpop.xlane.xlu2 %1362 }
 0x43b   : > { %v1374_v41 = vmul.f32 %v2292_v39, %v1363_v40 }
 0x43d   : > { %v1376_v15 = vsub.f32 %v1357_v23, %v1374_v41  ;;  %v1465_v23 = vld [vmem:[%s2153_s28 + $0x20] sm:$0xff] }
 0x43e   : > { %1492 = vmatpush.msrb.mxu2 %v1465_v23 }
 0x43f   : > { %v1378_v42 = vmul.f32 %v1376_v15, %v1376_v15 }
 0x440   : > { %1493 = vmatpush.msrb.mxu2 %v1464_v25 }
 0x441   : > { %v1380_v43 = vsel %vm718_vm0, %v1378_v42, 0.0 }
 0x442   : > { %1381 = vadd.xlane.f32.xlu0 %v1380_v43 }
 0x44c   : > { %v1366_v44 = vpop.xlane.xlu1 %1365 }
 0x44d   : > { %v1375_v45 = vmul.f32 %v2292_v39, %v1366_v44 }
 0x44f   : > { %v2297_v46 = vsub.f32 %v1358_v32, %v1375_v45  ;;  %v1463_v32 = vld [vmem:[%s2153_s28 + $0x10] sm:$0xff] }
 0x450   : > { %1494 = vmatpush.msrb.mxu2 %v1463_v32 }
 0x451   : > { %v1379_v47 = vmul.f32 %v2297_v46, %v2297_v46 }
 0x452   : > { %1495 = vmatpush.msrb.mxu2 %v1462_v33 }
 0x453   : > { %v1383_v48 = vsel %vm718_vm0, %v1379_v47, 0.0 }
 0x454   : > { %1384 = vadd.xlane.f32.xlu2 %v1383_v48  ;;  %1496 = vmatpush.msrb.mxu2 %v1461_v34 }
 0x4b5   : > { %v1382_v53 = vpop.xlane.xlu0 %1381 }
 0x4b6   : > { %v1386_v54 = vmul.f32 %v1382_v53, %v2292_v39 }
 0x4b8   : > { %v1388_v55 = vadd.f32 1e-05, %v1386_v54 }
 0x4ba   : > { %1924 = vrsqrt.f32 %v1388_v55  ;;  %vm1396_vm6 = vweird.f32 %v1388_v55 }
 0x4c0   : > { %v1925_v56 = vpop.eup %1924 }
 0x4c1   : > { %v1391_v57 = vmul.f32 %v1925_v56, %v1388_v55  ;;  %vm1397_vm5 = vweird.f32 %v1925_v56 }
 0x4c2   : > { %vm1398_vm7 = vmor %vm1396_vm6, %vm1397_vm5 }
 0x4c3   : > { %v1392_v58 = vmul.f32 %v1925_v56, %v1391_v57 }
 0x4c5   : > { %v1393_v60 = vmul.f32 0.5, %v1392_v58 }
 0x4c7   : > { %v1394_v62 = vsub.f32 1.5, %v1393_v60  ;;  %v1385_v63 = vpop.xlane.xlu2 %1384 }
 0x4c8   : > { %v1387_v0 = vmul.f32 %v1385_v63, %v2292_v39 }
 0x4c9   : > { %v1395_v2 = vmul.f32 %v1925_v56, %v1394_v62 }
 0x4ca   : > { %v1389_v4 = vadd.f32 1e-05, %v1387_v0 }
 0x4cb   : > { %v1399_v6 = vsel %vm1398_vm7, %v1925_v56, %v1395_v2 }
 0x4cc   : > { %v1410_v7 = vmul.f32 %v1399_v6, %v1376_v15  ;;  %1926 = vrsqrt.f32 %v1389_v4  ;;  %vm1406_vm9 = vweird.f32 %v1389_v4  ;;  %v1887_v15 = vld [vmem:[%s671_s16] ss:$0 sm:$0xff] }
 0x4cd   : > { %v1888_v6 = vld [vmem:[%s674_s2] ss:$0 sm:$0xff] }
 0x4ce   : > { %v1415_v10 = vmul.f32 %v1884_v3, %v1410_v7 }
 0x4d0   : > { %v1420_v13 = vadd.f32 %v1885_v8, %v1415_v10 }
 0x4d2   : > { %v1927_v16 = vpop.eup %1926  ;;  %1820 = vmatmul.msk.f32.vlgmr.msra.gmra.mxu1 %vm718_vm0, %v1420_v13 }
 0x4d3   : > { %v1401_v18 = vmul.f32 %v1927_v16, %v1389_v4  ;;  %vm1407_vm8 = vweird.f32 %v1927_v16 }
 0x4d4   : > { %vm1408_vm10 = vmor %vm1406_vm9, %vm1407_vm8 }
 0x4d5   : > { %v1402_v20 = vmul.f32 %v1927_v16, %v1401_v18 }
 0x4d7   : > { %v1403_v22 = vmul.f32 0.5, %v1402_v20 }
 0x4d9   : > { %v1404_v24 = vsub.f32 1.5, %v1403_v22 }
 0x4db   : > { %v1405_v26 = vmul.f32 %v1927_v16, %v1404_v24 }
 0x4dd   : > { %v1409_v27 = vsel %vm1408_vm10, %v1927_v16, %v1405_v26 }
 0x4de   : > { %v1411_v28 = vmul.f32 %v1409_v27, %v2297_v46 }
 0x4e0   : > { %v1416_v29 = vmul.f32 %v1884_v3, %v1411_v28 }
 0x4e2   : > { %v1421_v31 = vadd.f32 %v1885_v8, %v1416_v29 }
 0x4e4   : > { %1821 = vmatmul.msk.f32.gmra.mxu1 %vm718_vm0, %v1421_v31 }
 0x54f   : > { %v1453_v36 = vpop.f32.mrf.mxu1 }
 0x550   : > { %v1454_v12 = vadd.f32 %v1886_v35, %v1453_v36 }
 0x552   : > { %v1459_v37 = vmax.f32 %v1454_v12, 0.0 }
 0x554   : > { %1497 = vmatmul.f32.vlgmr.msrb.gmra.mxu2 %v1459_v37 }
 0x561   : > { %v1456_v38 = vpop.f32.mrf.mxu1 }
 0x562   : > { %v1457_v40 = vadd.f32 %v1886_v35, %v1456_v38 }
 0x564   : > { %v1460_v41 = vmax.f32 %v1457_v40, 0.0 }
 0x566   : > { %1500 = vmatmul.f32.gmra.mxu2 %v1460_v41 }
 0x5d7   : > { %v1498_v42 = vpop.f32.mrf.mxu2 }
 0x5d8   : > { %v1499_v43 = vadd.f32 %v1887_v15, %v1498_v42 }
 0x5da   : > { %v1504_v44 = vadd.f32 %v1499_v43, %v1420_v13 }
 0x5dc   : > { %v1508_v45 = vsel %vm718_vm0, %v1504_v44, 0.0 }
 0x5dd   : > { %1509 = vadd.xlane.f32.xlu2 %v1508_v45 }
 0x5e9   : > { %v1501_v46 = vpop.f32.mrf.mxu2 }
 0x5ea   : > { %v1502_v47 = vadd.f32 %v1887_v15, %v1501_v46 }
 0x5ec   : > { %v1505_v48 = vadd.f32 %v1502_v47, %v1421_v31 }
 0x5ee   : > { %v1511_v49 = vsel %vm718_vm0, %v1505_v48, 0.0 }
 0x5ef   : > { %1512 = vadd.xlane.f32.xlu2 %v1511_v49 }
 0x650   : > { %v1510_v50 = vpop.xlane.xlu2 %1509 }
 0x651   : > { %v1514_v51 = vmul.f32 %v1510_v50, %v2292_v39 }
 0x653   : > { %v1516_v52 = vsub.f32 %v1504_v44, %v1514_v51 }
 0x655   : > { %v1518_v53 = vmul.f32 %v1516_v52, %v1516_v52 }
 0x657   : > { %v1520_v54 = vsel %vm718_vm0, %v1518_v53, 0.0 }
 0x658   : > { %1521 = vadd.xlane.f32.xlu2 %v1520_v54 }
 0x662   : > { %v1513_v55 = vpop.xlane.xlu2 %1512 }
 0x663   : > { %v1515_v56 = vmul.f32 %v1513_v55, %v2292_v39 }
 0x665   : > { %v1517_v57 = vsub.f32 %v1505_v48, %v1515_v56 }
 0x667   : > { %v1519_v58 = vmul.f32 %v1517_v57, %v1517_v57 }
 0x669   : > { %v1523_v30 = vsel %vm718_vm0, %v1519_v58, 0.0 }
 0x66a   : > { %1524 = vadd.xlane.f32.xlu2 %v1523_v30 }
 0x6cb   : > { %v1522_v59 = vpop.xlane.xlu2 %1521 }
 0x6cc   : > { %v1526_v60 = vmul.f32 %v1522_v59, %v2292_v39 }
 0x6ce   : > { %v1528_v61 = vadd.f32 1e-05, %v1526_v60 }
 0x6d0   : > { %1928 = vrsqrt.f32 %v1528_v61  ;;  %vm1536_vm12 = vweird.f32 %v1528_v61 }
 0x6d6   : > { %v1929_v62 = vpop.eup %1928 }
 0x6d7   : > { %v1531_v63 = vmul.f32 %v1929_v62, %v1528_v61  ;;  %vm1537_vm11 = vweird.f32 %v1929_v62 }
 0x6d8   : > { %vm1538_vm13 = vmor %vm1536_vm12, %vm1537_vm11 }
 0x6d9   : > { %v1532_v0 = vmul.f32 %v1929_v62, %v1531_v63 }
 0x6db   : > { %v1533_v1 = vmul.f32 0.5, %v1532_v0 }
 0x6dd   : > { %v1534_v2 = vsub.f32 1.5, %v1533_v1  ;;  %v1525_v3 = vpop.xlane.xlu2 %1524 }
 0x6de   : > { %v1527_v4 = vmul.f32 %v1525_v3, %v2292_v39 }
 0x6df   : > { %v1535_v5 = vmul.f32 %v1929_v62, %v1534_v2 }
 0x6e0   : > { %v1529_v7 = vadd.f32 1e-05, %v1527_v4 }
 0x6e1   : > { %v1539_v8 = vsel %vm1538_vm13, %v1929_v62, %v1535_v5 }
 0x6e2   : > { %v1550_v10 = vmul.f32 %v1539_v8, %v1516_v52  ;;  %1930 = vrsqrt.f32 %v1529_v7  ;;  %vm1546_vm15 = vweird.f32 %v1529_v7 }
 0x6e4   : > { %v1555_v11 = vmul.f32 %v1888_v6, %v1550_v10 }
 0x6e6   : > { %v1560_v13 = vadd.f32 %v1889_v9, %v1555_v11 }
 0x6e8   : > { %v1931_v39 = vpop.eup %1930  ;;  %1562 = vst.msk [vmem:[#allocation2] sm:$0xff] %vm718_vm0, %v1560_v13 }
 0x6e9   : > { %v1541_v14 = vmul.f32 %v1931_v39, %v1529_v7  ;;  %vm1547_vm14 = vweird.f32 %v1931_v39 }
 0x6ea   : > { %vm1548_vm1 = vmor %vm1546_vm15, %vm1547_vm14 }
 0x6eb   : > { %v1542_v16 = vmul.f32 %v1931_v39, %v1541_v14 }
 0x6ed   : > { %v1543_v17 = vmul.f32 0.5, %v1542_v16 }
 0x6ef   : > { %v1544_v18 = vsub.f32 1.5, %v1543_v17 }
 0x6f1   : > { %v1545_v19 = vmul.f32 %v1931_v39, %v1544_v18 }
 0x6f3   : > { %v1549_v20 = vsel %vm1548_vm1, %v1931_v39, %v1545_v19 }
 0x6f4   : > { %v1551_v21 = vmul.f32 %v1549_v20, %v1517_v57 }
 0x6f6   : > { %v1556_v22 = vmul.f32 %v1888_v6, %v1551_v21  ;;  %1567 = sbr.rel (%p1822_p6) target bundleno = 1789 (0x6fd), region = 103 }
 0x6f8   : > { %v1561_v23 = vadd.f32 %v1889_v9, %v1556_v22 }
 0x6fa   : > { %1563 = vst.msk [vmem:[#allocation2 + $0x8] sm:$0xff] %vm718_vm0, %v1561_v23 }
 0x6fb   : > { %1568 = vst.msk [vmem:[#allocation4] sm:$0xff] %vm718_vm0, %v1560_v13 }
 0x6fc   : > { %1569 = vst.msk [vmem:[#allocation4 + $0x8] sm:$0xff] %vm718_vm0, %v1561_v23 }
 0x6fd PF: > { %s2429_s23 = sld [smem:[#allocation11_spill]]  ;;  %s1997_s30 = smov [#allocation4]  }
 0x6fe   : > { %s2431_s18 = sld [smem:[#allocation18_spill]]  ;;  %s1578_s27 = sshll.u32 %s1997_s30, 4  ;;  %s1579_s27 = int_to_ptr.vmem [resolvable:$true] %s1578_s27 }
 0x6ff   : > { %s1998_s29 = smov 128  }
 0x703   : > { %s2430_s2 = sadd.s32 4294967295, %s2429_s23  }
 0x704   : > { %p1841_p7 = scmp.eq.s32.totalorder %s2430_s2, 1  ;;  %s1580_s21 = sshll.u32 %s2431_s18, 4  ;;  %s1581_s21 = int_to_ptr.hbm [resolvable:$true] %s1580_s21 }
 0x706   : > { %1838 = dma.vmem_to_hbm [thread:$0]  (%p1841_p7), %s1579_s27, 256, %s1581_s21, [#allocation5], %s1998_s29, %s1998_s29, %s1994_s3  }
 0x707   : > { %1975 = dma.done.wait (%p1841_p7), [#allocation5], 256  }
 0x708   : > { %1977 = vsyncadd (%p1841_p7), [#allocation5], 4294967040 }
 0x709 PF: > { %s2432_s17 = sld [smem:[#allocation11_spill]] }
 0x70a   : > { %s2433_s18 = sld [smem:[#allocation10_spill]] }
 0x70b   : > { %s2434_s19 = sld [smem:[#allocation12_spill]] }
 0x70f   : > { %s26_s20 = sadd.s32 1, %s2432_s17  }
 0x710   : > { %p23_p8 = scmp.ge.s32.totalorder %s26_s20, 4  }
 0x712   :  { %25 = sbr.rel (!%p23_p8) target bundleno = 9 (0x9), region = 175 }
 0x717   :  { %1597 = vsyncpa [#allocation5], 1 }
 0x718   :  { %1599 = vsyncpa [#allocation5 + $0x1], 1 }
 0x719   :  { %1600 = vsyncmov [#allocation3] }
 0x71c   :  { %s1601_s24 = vpop.sfrf %1600 }
 0x71d   :  { %p1827_p9 = scmp.ne.s32.totalorder %s1601_s24, 0 }
 0x71f   :  { %1605 = shalt.err (%p1827_p9)  }

</bundles_post_ra>
